<compile_context>
chip_gen: v7x
topology: tpu7x:2x2x1
jax: 0.10.0
libtpu: 0.0.40
codegen_flags: <defaults>
</compile_context>

<pallas_src>
import jax
import jax.numpy as jnp
from jax import lax
from jax.experimental import pallas as pl
from jax.experimental.pallas import tpu as pltpu


def _conv1x1_kernel(x_ref, w_ref, b_ref, o_ref):
    # 1x1 conv == matmul over channels.  Emit a lane-dense (K, tile_m) tile:
    # contract the channel dim of w (K, C) with the channel dim of x (tm, C).
    acc = lax.dot_general(
        w_ref[...], x_ref[...],
        dimension_numbers=(((1,), (1,)), ((), ())),
        preferred_element_type=jnp.float32,
    )
    o_ref[...] = acc + b_ref[...]           # bias broadcasts over the lane dim


def _pick_tile_m(hw, batch, target):
    """Multiple-of-128 token tile <= H*W; keep >=2 grid steps when B == 1."""
    if hw <= 128:
        return hw                            # full-extent block (always legal)
    t = min(target, hw)
    if batch == 1 and hw > 256:
        t = min(t, -(-hw // 2))              # ceil(hw/2) -> >=2 steps (megacore)
    return max(128, (t // 128) * 128)


def linear_classifier_forward(embeddings, weight, bias, *, height, width,
                              tile_m=4096, use_bf16=False):
    """
    embeddings: any shape that reshapes to (-1, height, width, in_channels)
                (e.g. (B, height*width, in_channels) as DINO produces).
    weight:     (num_labels, in_channels)  -- Conv2d 1x1 kernel squeezed.
    bias:       (num_labels,)
    returns:    (B, num_labels, height, width)  (NCHW, like the PyTorch module)
    """
    num_labels, in_channels = weight.shape

    x = embeddings.reshape(-1, height, width, in_channels)    # (B, H, W, C)
    B = x.shape[0]
    HW = height * width
    M = B * HW
    x3d = x.reshape(B, HW, in_channels)                       # (B, HW, C) - no copy

    if use_bf16:
        # TODO(synk): bf16 inputs halve HBM reads; re-validate tolerance if enabled.
        x3d = x3d.astype(jnp.bfloat16)
        w2d = weight.astype(jnp.bfloat16)
    else:
        w2d = weight.astype(x3d.dtype)                        # (K, C)
    b2d = bias.reshape(num_labels, 1).astype(jnp.float32)     # (K, 1)

    tm = _pick_tile_m(HW, B, tile_m)
    grid = (B, pl.cdiv(HW, tm))            # ragged token tail masked by Pallas

    bytes_accessed = int(
        x3d.dtype.itemsize * M * in_channels        # read x
        + 4 * M * num_labels                        # write out (f32)
        + w2d.dtype.itemsize * num_labels * in_channels
        + 4 * num_labels)

    out = pl.pallas_call(
        _conv1x1_kernel,
        out_shape=jax.ShapeDtypeStruct((B, num_labels, HW), jnp.float32),
        grid_spec=pltpu.PrefetchScalarGridSpec(
            num_scalar_prefetch=0,
            grid=grid,
            in_specs=[
                # x: (B, HW, C); leading batch dim squeezed out of the kernel view.
                pl.BlockSpec((None, tm, in_channels), lambda b, j: (b, j, 0)),
                # weight / bias: resident in VMEM (same block every grid point).
                pl.BlockSpec((num_labels, in_channels), lambda b, j: (0, 0)),
                pl.BlockSpec((num_labels, 1), lambda b, j: (0, 0)),
            ],
            # out: (B, K, HW); kernel writes a lane-dense (K, tm) tile.
            out_specs=pl.BlockSpec((None, num_labels, tm), lambda b, j: (b, 0, j)),
        ),
        compiler_params=pltpu.CompilerParams(
            dimension_semantics=("parallel", "parallel")),
        cost_estimate=pl.CostEstimate(
            flops=2 * M * in_channels * num_labels,
            transcendentals=0,
            bytes_accessed=bytes_accessed),
    )(x3d, w2d, b2d)

    # (B, K, HW) -> (B, K, H, W): free reshape, no transpose needed.
    return out.reshape(B, num_labels, height, width)


if __name__ == "__main__":
    # Small shapes consistent with the module.
    B, H, W, C, K = 2, 16, 16, 32, 4

    key = jax.random.PRNGKey(0)
    kx, kw, kb = jax.random.split(key, 3)

    # Conv2d(1x1) weight (K, C, 1, 1) squeezed to (K, C); bias (K,).
    weight = jax.random.normal(kw, (K, C), dtype=jnp.float32) * 0.02
    bias = jax.random.normal(kb, (K,), dtype=jnp.float32) * 0.01

    # Embeddings in token layout (B, H*W, C); module reshapes to (-1, H, W, C).
    embeddings = jax.random.normal(kx, (B, H * W, C), dtype=jnp.float32)

    out = linear_classifier_forward(embeddings, weight, bias, height=H, width=W)
    out = jax.block_until_ready(out)

    # Reference: same math as the torch 1x1 conv on the permuted input.
    ref = jnp.einsum("bhwc,kc->bkhw",
                     embeddings.reshape(B, H, W, C), weight) + bias[None, :, None, None]
    assert out.shape == (B, K, H, W), out.shape
    assert jnp.allclose(out, ref, atol=1e-5), float(jnp.max(jnp.abs(out - ref)))

    print("KERNEL_OK")
</pallas_src>

<mosaic_0001>
module attributes {stable_mosaic.version = 11 : i64} {
  func.func @_conv1x1_kernel(%arg0: i32, %arg1: i32, %arg2: memref<1x256x32xf32, #tpu.memory_space<vmem>>, %arg3: memref<4x32xf32, #tpu.memory_space<vmem>>, %arg4: memref<4x1xf32, #tpu.memory_space<vmem>>, %arg5: memref<1x4x256xf32, #tpu.memory_space<vmem>>) attributes {dimension_semantics = [#tpu.dimension_semantics<parallel>, #tpu.dimension_semantics<parallel>], iteration_bounds = array<i64: 2, 1>, scalar_prefetch = 0 : i64, scratch_operands = 0 : i64, tpu.core_type = #tpu.core_type<tc>, window_params = [{transform_indices = @transform_0, window_bounds = array<i64: 1, 256, 32>}, {pipeline_mode = #tpu.pipeline_mode<synchronous>, transform_indices = @transform_1, window_bounds = array<i64: 4, 32>}, {pipeline_mode = #tpu.pipeline_mode<synchronous>, transform_indices = @transform_2, window_bounds = array<i64: 4, 1>}, {transform_indices = @transform_3, window_bounds = array<i64: 1, 4, 256>}]} {
    %c0 = arith.constant 0 : index
    %c0_0 = arith.constant 0 : index
    %0 = vector.load %arg3[%c0, %c0_0] : memref<4x32xf32, #tpu.memory_space<vmem>>, vector<4x32xf32>
    %c0_1 = arith.constant 0 : index
    %c0_2 = arith.constant 0 : index
    %c0_3 = arith.constant 0 : index
    %1 = vector.load %arg2[%c0_1, %c0_2, %c0_3] : memref<1x256x32xf32, #tpu.memory_space<vmem>>, vector<1x256x32xf32>
    %2 = vector.shape_cast %1 : vector<1x256x32xf32> to vector<256x32xf32>
    %cst = arith.constant dense<0.000000e+00> : vector<4x256xf32>
    %3 = tpu.matmul %0, %2, %cst {dimension_numbers = #tpu.dot_dimension_numbers<[1], [1], [0], [0], [0, 0, 1, 0], [], []>} : vector<4x32xf32>, vector<256x32xf32>, vector<4x256xf32> -> vector<4x256xf32>
    %c0_4 = arith.constant 0 : index
    %c0_5 = arith.constant 0 : index
    %4 = vector.load %arg4[%c0_4, %c0_5] : memref<4x1xf32, #tpu.memory_space<vmem>>, vector<4x1xf32>
    %5 = vector.broadcast %4 : vector<4x1xf32> to vector<4x256xf32>
    %6 = arith.addf %3, %5 : vector<4x256xf32>
    %c0_6 = arith.constant 0 : index
    %c0_7 = arith.constant 0 : index
    %c0_8 = arith.constant 0 : index
    %7 = vector.load %arg5[%c0_6, %c0_7, %c0_8] : memref<1x4x256xf32, #tpu.memory_space<vmem>>, vector<1x4x256xf32>
    %8 = vector.shape_cast %7 : vector<1x4x256xf32> to vector<4x256xf32>
    %9 = vector.shape_cast %6 : vector<4x256xf32> to vector<1x4x256xf32>
    tpu.vector_store %arg5[%c0_6, %c0_7, %c0_8], %9 {strides = array<i32>} : memref<1x4x256xf32, #tpu.memory_space<vmem>>, vector<1x4x256xf32>,
    return
  }
  func.func @transform_0(%arg0: i32, %arg1: i32) -> (i32, i32, i32) {
    %c0_i32 = arith.constant 0 : i32
    %c0_i32_0 = arith.constant 0 : i32
    return %arg0, %arg1, %c0_i32 : i32, i32, i32
  }
  func.func @transform_1(%arg0: i32, %arg1: i32) -> (i32, i32) {
    %c0_i32 = arith.constant 0 : i32
    %c0_i32_0 = arith.constant 0 : i32
    %c0_i32_1 = arith.constant 0 : i32
    return %c0_i32, %c0_i32_0 : i32, i32
  }
  func.func @transform_2(%arg0: i32, %arg1: i32) -> (i32, i32) {
    %c0_i32 = arith.constant 0 : i32
    %c0_i32_0 = arith.constant 0 : i32
    %c0_i32_1 = arith.constant 0 : i32
    return %c0_i32, %c0_i32_0 : i32, i32
  }
  func.func @transform_3(%arg0: i32, %arg1: i32) -> (i32, i32, i32) {
    %c0_i32 = arith.constant 0 : i32
    %c0_i32_0 = arith.constant 0 : i32
    return %arg0, %c0_i32, %arg1 : i32, i32, i32
  }
}

</mosaic_0001>

<bundles_post_ra>
// kernel: tpu_custom_call.1
= control target key start
LH: loop header
LB: loop body
LE: loop exit
PB: predicated region body
PF: predicated region fallthrough
CT: control target
= control target key end

     0   :  { %8 = vsyncpa [#allocation3], 0  ;;  %s993_s0 = inlined_call_operand.vmem [shape: f32[2,256,32], index: 0, kind: input, shape index: {}]   ;;  %s994_s1 = inlined_call_operand.vmem [shape: f32[4,32], index: 1, kind: input, shape index: {}]   ;;  %s995_s2 = inlined_call_operand.vmem [shape: f32[4,1], index: 2, kind: input, shape index: {}]   ;;  %s996_s3 = inlined_call_operand.hbm [shape: f32[2,4,256], index: 3, kind: output, shape index: {}]  }
   0x1   :  { %10 = vsyncpa [#allocation3 + $0x1], 0  ;;  %s797_s12 = smov 0   ;;  %s799_s13 = smov 0  }
   0x2   :  { %s801_s14 = smov 0   ;;  %s803_s15 = smov 0  }
   0x3   :  { %s805_s16 = smov 0   ;;  %s807_s17 = smov 0  }
   0x4 LB: > { %s508_s18 = sadd.s32 4294967295, %s773_s17   ;;  %s509_s19 = sadd.s32 4294967294, %s773_s17   ;;  %s773_s17 = sphi %s807_s17, %s16_s17   ;;  %s769_s16 = sphi %s805_s16, %s1005_s16   ;;  %s765_s15 = sphi %s803_s15, %s1004_s15   ;;  %s761_s14 = sphi %s801_s14, %s1003_s14   ;;  %s757_s13 = sphi %s799_s13, %s1002_s13   ;;  %s753_s12 = sphi %s797_s12, %s1001_s12  }
   0x5   : > { %s28_s20 = sadd.s32 1, %s769_s16  ;;  %s107_s21 = sadd.s32 1, %s761_s14 }
   0x6   : > { %p30_p0 = scmp.ge.s32.totalorder %s28_s20, 2  ;;  %p117_p1 = scmp.ne.s32.totalorder %s761_s14, %s757_s13 }
   0x7   : > { %p118_p2 = scmp.eq.s32.totalorder %s508_s18, 1  ;;  %p123_p3 = scmp.ne.s32.totalorder %s757_s13, %s753_s12 }
   0x8   : > { %s1007_s20 = smov (%p30_p0, %s28_s20), 0  ;;  %p124_p5 = scmp.eq.s32.totalorder %s509_s19, 1 }
   0x9   : > { %p837_p4 = por %p118_p2, %p117_p1  ;;  %s102_s23 = ssub.s32 %s769_s16, %s1007_s20 }
   0xa   : > { %p512_p6 = scmp.ge.s32.totalorder %s773_s17, 1  ;;  %p105_p7 = scmp.eq.s32.totalorder %s102_s23, 0 }
   0xb   : > { %p844_p8 = por %p124_p5, %p123_p3  ;;  %p161_p9 = scmp.lt.s32.totalorder %s773_s17, 3 }
   0xc   : > { %s850_s25 = scalar_select %p105_p7, %s761_s14, %s107_s21  }
   0xd   : > { %p162_p10 = pnand %p512_p6, %p161_p9 }
   0xe   : > { %p190_p11 = scmp.lt.s32.totalorder (!%p162_p10), %s765_s15, 1  ;;  %vm239_vm0 = vcmask (!%p162_p10), 261120   ;;  %v856_v0 = vld [vmem:[%s994_s1] sm:$0xf] (!%p162_p10)  ;;  %v775_v1 = vmov (!%p162_p10), 0   ;;  %s186_s8 = sand.u32 (!%p162_p10), 1, %s757_s13  }
   0xf   : > { %165 = sbr.rel (%p162_p10) target bundleno = 324 (0x144), region = 32  ;;  %588 = vmatprep.mubr.msk.f32.mxu0 (!%p162_p10), %vm239_vm0, %v856_v0  ;;  %694 = vset.pattern.permute.xlu0 (!%p162_p10), %v775_v1  ;;  %v233_v2 = vld [vmem:[%s995_s2] sm:$0xf] (!%p162_p10)  ;;  %vm871_vm1 = vmpackc.low (!%p162_p10), %vm239_vm0, %vm239_vm0  ;;  %s513_s9 = sshll.u32 (!%p162_p10), %s186_s8, 3 }
  0x10   : > { %236 = vperm.xlu0 (!%p162_p10), %694, %v233_v2   ;;  %s555_s10 = sshll.u32 (!%p162_p10), %s765_s15, 7  ;;  %s188_s11 = scalar_lea.vmem (!%p162_p10), [#allocation2], %s513_s9 }
  0x11   : > { %s432_s18 = sshll.u32 (!%p162_p10), %s188_s11, 4  ;;  %s946_s23 = scalar_lea.hbm (!%p162_p10), %s996_s3, %s555_s10  ;;  %s948_s18 = int_to_ptr.vmem [resolvable:$true] %s432_s18 }
  0x12   : > { %s416_s26 = scalar_lea.sflag (!%p162_p10), [#allocation3], %s186_s8  ;;  %s695_s27 = scalar_lea.vmem (!%p162_p10), %s948_s18, 128 }
  0x13   : > { %p696_p12 = scmp.ne.s32.totalorder (!%p162_p10), %s948_s18, %s695_s27 }
  0x15   : > { %p697_p13 = pnand (!%p162_p10), %p696_p12, %p837_p4 }
  0x16   : > { %s191_s30 = scalar_select %p190_p11, %s765_s15, 1 }
  0x17   : > { %p698_p0 = pneg %p697_p13  ;;  %s776_s15 = smov [#allocation2]  }
  0x18   : > { %s554_s4 = sshll.u32 %s191_s30, 8  ;;  %s699_s28 = sshll.u32 %s776_s15, 4  ;;  %s700_s28 = int_to_ptr.vmem [resolvable:$false] %s699_s28 }
  0x19   : > { %s867_s7 = scalar_lea.vmem %s993_s0, %s554_s4  ;;  %s701_s29 = scalar_lea.vmem %s700_s28, 256 }
  0x1a   : > { %v217_v4 = vld [vmem:[%s867_s7 + $0x80] sm:$0xff]  ;;  %v218_v5 = vld [vmem:[%s867_s7 + $0x88] sm:$0xff]  ;;  %v219_v9 = vld [vmem:[%s867_s7 + $0x90] sm:$0xff]  ;;  %p702_p1 = scmp.lt.s32.totalorder %s948_s18, %s700_s28  ;;  %p703_p2 = scmp.lt.s32.totalorder %s701_s29, %s695_s27 }
  0x1b   : > { %v201_v6 = vld [vmem:[%s867_s7] sm:$0xff]  ;;  %v590_v7 = vpack.c.bf16 %v218_v5, %v217_v4  ;;  %v202_v8 = vld [vmem:[%s867_s7 + $0x8] sm:$0xff]  ;;  %v220_v10 = vld [vmem:[%s867_s7 + $0x98] sm:$0xff] }
  0x1c   : > { %v593_v11 = vpack.c.bf16 %v202_v8, %v201_v6  ;;  %v596_v12 = vpack.c.bf16 %v220_v10, %v219_v9  ;;  %v203_v13 = vld [vmem:[%s867_s7 + $0x10] sm:$0xff]  ;;  %v204_v14 = vld [vmem:[%s867_s7 + $0x18] sm:$0xff]  ;;  %v221_v15 = vld [vmem:[%s867_s7 + $0xa0] sm:$0xff]  ;;  %p704_p3 = por %p703_p2, %p702_p1 }
  0x1d   : > { %592 = vmatprep.subr.msk.bf16.mxu0 %vm871_vm1, %v590_v7  ;;  %v222_v16 = vld [vmem:[%s867_s7 + $0xa8] sm:$0xff]  ;;  %v599_v17 = vpack.c.bf16 %v204_v14, %v203_v13  ;;  %v205_v19 = vld [vmem:[%s867_s7 + $0x20] sm:$0xff]  ;;  %v223_v21 = vld [vmem:[%s867_s7 + $0xb0] sm:$0xff] }
  0x1e   : > { %595 = vmatpush3.bf16.xpose.msk.msra.mxu0 %vm871_vm1, %v593_v11  ;;  %v602_v18 = vpack.c.bf16 %v222_v16, %v221_v15  ;;  %v206_v20 = vld [vmem:[%s867_s7 + $0x28] sm:$0xff]  ;;  %v224_v22 = vld [vmem:[%s867_s7 + $0xb8] sm:$0xff]  ;;  %v207_v25 = vld [vmem:[%s867_s7 + $0x30] sm:$0xff]  ;;  %p705_p5 = pnand %p704_p3, %p698_p0 }
  0x1f   : > { %598 = vmatprep.subr.msk.bf16.mxu0 %vm871_vm1, %v596_v12  ;;  %v605_v23 = vpack.c.bf16 %v206_v20, %v205_v19  ;;  %v608_v24 = vpack.c.bf16 %v224_v22, %v223_v21  ;;  %v208_v26 = vld [vmem:[%s867_s7 + $0x38] sm:$0xff]  ;;  %v225_v27 = vld [vmem:[%s867_s7 + $0xc0] sm:$0xff]  ;;  %v226_v28 = vld [vmem:[%s867_s7 + $0xc8] sm:$0xff] }
  0x20   : > { %v611_v29 = vpack.c.bf16 %v208_v26, %v207_v25  ;;  %v614_v30 = vpack.c.bf16 %v226_v28, %v225_v27  ;;  %v209_v31 = vld [vmem:[%s867_s7 + $0x40] sm:$0xff]  ;;  %v210_v32 = vld [vmem:[%s867_s7 + $0x48] sm:$0xff]  ;;  %v227_v33 = vld [vmem:[%s867_s7 + $0xd0] sm:$0xff] }
  0x21   : > { %v228_v34 = vld [vmem:[%s867_s7 + $0xd8] sm:$0xff]  ;;  %v617_v35 = vpack.c.bf16 %v210_v32, %v209_v31  ;;  %v211_v37 = vld [vmem:[%s867_s7 + $0x50] sm:$0xff]  ;;  %v229_v39 = vld [vmem:[%s867_s7 + $0xe0] sm:$0xff] }
  0x22   : > { %v620_v36 = vpack.c.bf16 %v228_v34, %v227_v33  ;;  %v212_v38 = vld [vmem:[%s867_s7 + $0x58] sm:$0xff]  ;;  %v230_v40 = vld [vmem:[%s867_s7 + $0xe8] sm:$0xff]  ;;  %v213_v43 = vld [vmem:[%s867_s7 + $0x60] sm:$0xff] }
  0x23   : > { %v623_v41 = vpack.c.bf16 %v212_v38, %v211_v37  ;;  %v626_v42 = vpack.c.bf16 %v230_v40, %v229_v39  ;;  %v214_v44 = vld [vmem:[%s867_s7 + $0x68] sm:$0xff]  ;;  %v231_v45 = vld [vmem:[%s867_s7 + $0xf0] sm:$0xff]  ;;  %v232_v46 = vld [vmem:[%s867_s7 + $0xf8] sm:$0xff] }
  0x24   : > { %v629_v47 = vpack.c.bf16 %v214_v44, %v213_v43  ;;  %v632_v48 = vpack.c.bf16 %v232_v46, %v231_v45  ;;  %v215_v49 = vld [vmem:[%s867_s7 + $0x70] sm:$0xff]  ;;  %v216_v50 = vld [vmem:[%s867_s7 + $0x78] sm:$0xff] }
  0x25   : > { %v635_v51 = vpack.c.bf16 %v216_v50, %v215_v49 }
  0x26   : > { %601 = vmatpush3.bf16.xpose.msk.msra.mxu0 %vm871_vm1, %v599_v17 }
  0x27   : > { %604 = vmatprep.subr.msk.bf16.mxu0 %vm871_vm1, %v602_v18 }
  0x2e   : > { %607 = vmatpush3.bf16.xpose.msk.msra.mxu0 %vm871_vm1, %v605_v23 }
  0x2f   : > { %610 = vmatprep.subr.msk.bf16.mxu0 %vm871_vm1, %v608_v24 }
  0x36   : > { %613 = vmatpush3.bf16.xpose.msk.msra.mxu0 %vm871_vm1, %v611_v29 }
  0x37   : > { %616 = vmatprep.subr.msk.bf16.mxu0 %vm871_vm1, %v614_v30 }
  0x3e   : > { %619 = vmatpush3.bf16.xpose.msk.msra.mxu0 %vm871_vm1, %v617_v35 }
  0x3f   : > { %622 = vmatprep.subr.msk.bf16.mxu0 %vm871_vm1, %v620_v36 }
  0x46   : > { %625 = vmatpush3.bf16.xpose.msk.msra.mxu0 %vm871_vm1, %v623_v41 }
  0x47   : > { %628 = vmatprep.subr.msk.bf16.mxu0 %vm871_vm1, %v626_v42 }
  0x4e   : > { %631 = vmatpush3.bf16.xpose.msk.msra.mxu0 %vm871_vm1, %v629_v47 }
  0x4f   : > { %634 = vmatprep.subr.msk.bf16.mxu0 %vm871_vm1, %v632_v48 }
  0x56   : > { %637 = vmatpush3.bf16.xpose.msk.msra.mxu0 %vm871_vm1, %v635_v51 }
  0x5d   : > { %589 = vmatmul.mubr.msk.f32.vlgmr.msra.gmra.mrb[0].mxu0 %vm239_vm0, %v856_v0 }
  0x8f   : > { %v237_v52 = vpop.permute.xlu0 %236 }
 0x130   : > { %v405_v53 = vpop.f32.mrb[0].mxu0 }
 0x131   : > { %v406_v54 = vadd.f32 %v405_v53, %v237_v52  ;;  %v407_v55 = vpop.f32.mrb[1].mxu0 }
 0x132   : > { %v408_v56 = vadd.f32 %v407_v55, %v237_v52 }
 0x134   : > { %v412_v57 = vcombine.low %v406_v54, %v408_v56 }
 0x136   : > { %414 = vst [vmem:[%s188_s11] sm:$0xff] %v412_v57 }
 0x137   : > { %708 = shalt.err (!%p705_p5)
}
 0x138   : > { %s709_s30 = scalar_lea.hbm %s946_s23, 128  ;;  %s713_s6 = scalar_lea.hbm %s996_s3, 256 }
 0x139   : > { %p710_p6 = scmp.ne.s32.totalorder %s946_s23, %s709_s30  ;;  %p714_p10 = scmp.lt.u32.totalorder %s946_s23, %s996_s3 }
 0x13a   : > { %p715_p11 = scmp.lt.u32.totalorder %s713_s6, %s709_s30  ;;  %p717_p13 = scmp.lt.u32.totalorder %s709_s30, %s946_s23 }
 0x13b   : > { %p711_p7 = pnand %p710_p6, %p837_p4 }
 0x13c   : > { %p716_p12 = por %p715_p11, %p714_p10 }
 0x13d   : > { %p712_p9 = pneg %p711_p7 }
 0x13e   : > { %p718_p0 = por %p717_p13, %p716_p12 }
 0x140   : > { %p719_p1 = pnand %p718_p0, %p712_p9 }
 0x142   : > { %722 = shalt.err (!%p719_p1)
}
 0x143   : > { %638 = dma.vmem_to_hbm [thread:$0]  (%p837_p4), %s948_s18, 128, %s946_s23, %s416_s26  }
 0x144 PF: > { %p644_p2 = scmp.ge.s32.totalorder %s773_s17, 2  ;;  %s444_s9 = sand.u32 1, %s753_s12  }
 0x145   : > { %s445_s10 = scalar_lea.sflag [#allocation3], %s444_s9 }
 0x146   : > { %p641_p3 = pnand %p644_p2, %p844_p8 }
 0x148   : > { %748 = dma.done.wait (!%p641_p3), %s445_s10, 128  }
 0x149   : > { %750 = vsyncadd (!%p641_p3), %s445_s10, 4294967168  ;;  %s16_s17 = sadd.s32 1, %s773_s17   ;;  %s1001_s12 = smov %s757_s13 }
 0x14a   : > { %p13_p5 = scmp.ge.s32.totalorder %s16_s17, 4   ;;  %s1002_s13 = smov %s761_s14 }
 0x14b   : > { %s1003_s14 = smov %s850_s25  ;;  %s1004_s15 = smov %s769_s16 }
 0x14c   : > { %s1005_s16 = smov %s1007_s20  ;;  %15 = sbr.rel (!%p13_p5) target bundleno = 4 (0x4), region = 67 }
 0x153   :  { %450 = vsyncpa [#allocation3], 1 }
 0x154   :  { %452 = vsyncpa [#allocation3 + $0x1], 1 }

</bundles_post_ra>
